<compile_context>
chip_gen: v7x
topology: tpu7x:2x2x1
jax: 0.10.0
libtpu: 0.0.40
codegen_flags: <defaults>
</compile_context>

<pallas_src>
import functools

import jax
import jax.numpy as jnp
from jax.experimental import pallas as pl
from jax.experimental.pallas import tpu as pltpu


def _skip_gram_kernel(e0_ref, e1_ref, wv0_ref, wv1_ref, c_ref, o_ref):
    # e0_ref, e1_ref: (TB, H) VMEM  -- gathered embeddings, native dtype
    # wv0_ref:        (1, H)  f32 VMEM -- w1_a * (W2[0] - W2[1])
    # wv1_ref:        (1, H)  f32 VMEM -- w1_b * (W2[0] - W2[1])
    # c_ref:          (1, 1)  f32 SMEM -- b1*sum(wd) + b2[0] - b2[1]
    # o_ref:          (2, TB) f32 VMEM -- class-major probabilities (lane dense)
    e0 = e0_ref[...].astype(jnp.float32)          # (TB, H)
    e1 = e1_ref[...].astype(jnp.float32)          # (TB, H)

    # Fused Linear1/Linear2 class-difference: pure VPU multiplies.
    prod = e0 * wv0_ref[...] + e1 * wv1_ref[...]  # (TB, H)

    # Lane reduction (XLU) + folded bias (SMEM scalar).
    d = jnp.sum(prod, axis=1) + c_ref[0, 0]       # (TB,)

    # Exact 2-class softmax via sigmoid of the logit difference (EUP exp).
    p0 = 1.0 / (1.0 + jnp.exp(-d))                # (TB,)

    # Lane-dense, unmasked row stores.
    o_ref[0, :] = p0
    o_ref[1, :] = 1.0 - p0


@functools.partial(jax.jit, static_argnames=("block_b",))
def skip_gram_forward(indices, emb_table, w1, b1, w2, b2, *, block_b=1024):
    B = indices.shape[0]
    _, H = emb_table.shape

    # --- Fold the tiny Linear1/Linear2/softmax parameters (cheap, weight-only).
    w1f = jnp.asarray(w1, jnp.float32).reshape(-1)            # (2,)
    b1s = jnp.asarray(b1, jnp.float32).reshape(-1)[0]
    b2f = jnp.asarray(b2, jnp.float32).reshape(-1)            # (2,)
    wd = (jnp.asarray(w2, jnp.float32)[0] - jnp.asarray(w2, jnp.float32)[1])  # (H,)
    wv0 = (w1f[0] * wd).reshape(1, H)
    wv1 = (w1f[1] * wd).reshape(1, H)
    c = (b1s * jnp.sum(wd) + b2f[0] - b2f[1]).reshape(1, 1)

    # --- Batch tiling: pad the (cheap) indices so gathered slabs are tile-aligned.
    tb = block_b
    if B < tb:
        tb = ((B + 127) // 128) * 128          # at least one lane-dense tile
    bp = ((B + tb - 1) // tb) * tb
    pad = bp - B
    idx = jnp.asarray(indices, jnp.int32)
    if pad:
        idx = jnp.concatenate([idx, jnp.zeros((pad, 2), jnp.int32)], axis=0)

    # Gather directly into two lane-dense (Bp, H) slabs, NATIVE dtype (no host cast).
    e0 = jnp.take(emb_table, idx[:, 0], axis=0)                # (Bp, H)
    e1 = jnp.take(emb_table, idx[:, 1], axis=0)                # (Bp, H)

    num_tiles = bp // tb
    out_cm = pl.pallas_call(
        _skip_gram_kernel,
        out_shape=jax.ShapeDtypeStruct((2, bp), jnp.float32),
        grid=(num_tiles,),
        in_specs=[
            pl.BlockSpec((tb, H), lambda i: (i, 0)),                    # e0 slab
            pl.BlockSpec((tb, H), lambda i: (i, 0)),                    # e1 slab
            pl.BlockSpec((1, H), lambda i: (0, 0)),                     # wv0 (resident)
            pl.BlockSpec((1, H), lambda i: (0, 0)),                     # wv1 (resident)
            pl.BlockSpec(memory_space=pltpu.MemorySpace.SMEM),          # folded bias
        ],
        out_specs=pl.BlockSpec((2, tb), lambda i: (0, i)),              # class-major
        compiler_params=pltpu.CompilerParams(
            dimension_semantics=("parallel",),      # megacore sharding on v7x
            vmem_limit_bytes=32 * 1024 * 1024,      # explicit, safe on v5e/v6e/v7x
        ),
    )(e0, e1, wv0, wv1, c)

    # Tiny layout plumbing back to the PyTorch (B, 2) output.
    return out_cm.T[:B]


def reference_forward(indices, emb_table, w1, b1, w2, b2):
    e = jnp.take(emb_table, indices, axis=0)          # (B, 2, H)
    t = jnp.transpose(e, (0, 2, 1))                   # (B, H, 2)
    h = (t @ w1.T + b1)[..., 0]                       # (B, H)
    logits = h @ w2.T + b2                            # (B, 2)
    return jax.nn.softmax(logits, axis=-1)


if __name__ == "__main__":
    vocab_size = 32
    hidden_dim = 16
    batch = 8

    key = jax.random.PRNGKey(0)
    k_emb, k_w1, k_b1, k_w2, k_b2, k_idx = jax.random.split(key, 6)

    # Deterministic parameter init (shapes match the PyTorch module).
    emb_table = jax.random.normal(k_emb, (vocab_size, hidden_dim), jnp.float32)
    bound1 = 1.0 / jnp.sqrt(2.0)
    w1 = jax.random.uniform(k_w1, (1, 2), jnp.float32, -bound1, bound1)
    b1 = jax.random.uniform(k_b1, (1,), jnp.float32, -bound1, bound1)
    bound2 = 1.0 / jnp.sqrt(float(hidden_dim))
    w2 = jax.random.uniform(k_w2, (2, hidden_dim), jnp.float32, -bound2, bound2)
    b2 = jax.random.uniform(k_b2, (2,), jnp.float32, -bound2, bound2)

    # Input: a batch of (center, context) token-index pairs.
    indices = jax.random.randint(k_idx, (batch, 2), 0, vocab_size, jnp.int32)

    out = skip_gram_forward(indices, emb_table, w1, b1, w2, b2)
    out = jax.block_until_ready(out)

    ref = reference_forward(indices, emb_table, w1, b1, w2, b2)
    assert out.shape == (batch, 2)
    assert jnp.allclose(out, ref, atol=1e-5, rtol=1e-5), float(
        jnp.max(jnp.abs(out - ref)))

    print("KERNEL_OK")
</pallas_src>

<mosaic_0001>
module attributes {stable_mosaic.version = 11 : i64} {
  func.func @_skip_gram_kernel(%arg0: i32, %arg1: memref<128x16xf32, #tpu.memory_space<vmem>>, %arg2: memref<128x16xf32, #tpu.memory_space<vmem>>, %arg3: memref<1x16xf32, #tpu.memory_space<vmem>>, %arg4: memref<1x16xf32, #tpu.memory_space<vmem>>, %arg5: memref<1x1xf32, #tpu.memory_space<smem>>, %arg6: memref<2x128xf32, #tpu.memory_space<vmem>>) attributes {dimension_semantics = [#tpu.dimension_semantics<parallel>], iteration_bounds = array<i64: 1>, scalar_prefetch = 0 : i64, scratch_operands = 0 : i64, tpu.core_type = #tpu.core_type<tc>, window_params = [{transform_indices = @transform_0, window_bounds = array<i64: 128, 16>}, {transform_indices = @transform_1, window_bounds = array<i64: 128, 16>}, {pipeline_mode = #tpu.pipeline_mode<synchronous>, transform_indices = @transform_2, window_bounds = array<i64: 1, 16>}, {pipeline_mode = #tpu.pipeline_mode<synchronous>, transform_indices = @transform_3, window_bounds = array<i64: 1, 16>}, {transform_indices = @transform_4, window_bounds = array<i64: 1, 1>}, {transform_indices = @transform_5, window_bounds = array<i64: 2, 128>}]} {
    %c0 = arith.constant 0 : index
    %c0_0 = arith.constant 0 : index
    %0 = vector.load %arg1[%c0, %c0_0] : memref<128x16xf32, #tpu.memory_space<vmem>>, vector<128x16xf32>
    %c0_1 = arith.constant 0 : index
    %c0_2 = arith.constant 0 : index
    %1 = vector.load %arg2[%c0_1, %c0_2] : memref<128x16xf32, #tpu.memory_space<vmem>>, vector<128x16xf32>
    %c0_3 = arith.constant 0 : index
    %c0_4 = arith.constant 0 : index
    %2 = vector.load %arg3[%c0_3, %c0_4] : memref<1x16xf32, #tpu.memory_space<vmem>>, vector<1x16xf32>
    %3 = vector.broadcast %2 : vector<1x16xf32> to vector<128x16xf32>
    %4 = arith.mulf %0, %3 : vector<128x16xf32>
    %c0_5 = arith.constant 0 : index
    %c0_6 = arith.constant 0 : index
    %5 = vector.load %arg4[%c0_5, %c0_6] : memref<1x16xf32, #tpu.memory_space<vmem>>, vector<1x16xf32>
    %6 = vector.broadcast %5 : vector<1x16xf32> to vector<128x16xf32>
    %7 = arith.mulf %1, %6 : vector<128x16xf32>
    %8 = arith.addf %4, %7 : vector<128x16xf32>
    %cst = arith.constant dense<0.000000e+00> : vector<128xf32>
    %9 = vector.multi_reduction <add>, %8, %cst [1] : vector<128x16xf32> to vector<128xf32>
    %c0_7 = arith.constant 0 : index
    %c0_8 = arith.constant 0 : index
    %10 = memref.load %arg5[%c0_7, %c0_8] : memref<1x1xf32, #tpu.memory_space<smem>>
    %11 = vector.broadcast %10 : f32 to vector<128xf32>
    %12 = arith.addf %9, %11 : vector<128xf32>
    %cst_9 = arith.constant 0.000000e+00 : f32
    %13 = vector.broadcast %cst_9 : f32 to vector<128xf32>
    %14 = arith.subf %13, %12 : vector<128xf32>
    %15 = math.exp %14 : vector<128xf32>
    %cst_10 = arith.constant 1.000000e+00 : f32
    %16 = vector.broadcast %cst_10 : f32 to vector<128xf32>
    %17 = arith.addf %16, %15 : vector<128xf32>
    %cst_11 = arith.constant 1.000000e+00 : f32
    %18 = vector.broadcast %cst_11 : f32 to vector<128xf32>
    %19 = arith.divf %18, %17 : vector<128xf32>
    %c0_12 = arith.constant 0 : index
    %c0_13 = arith.constant 0 : index
    %20 = vector.load %arg6[%c0_12, %c0_13] : memref<2x128xf32, #tpu.memory_space<vmem>>, vector<1x128xf32>
    %21 = vector.shape_cast %20 : vector<1x128xf32> to vector<128xf32>
    %22 = vector.shape_cast %19 : vector<128xf32> to vector<1x128xf32>
    tpu.vector_store %arg6[%c0_12, %c0_13], %22 {strides = array<i32>} : memref<2x128xf32, #tpu.memory_space<vmem>>, vector<1x128xf32>,
    %cst_14 = arith.constant 1.000000e+00 : f32
    %23 = vector.broadcast %cst_14 : f32 to vector<128xf32>
    %24 = arith.subf %23, %19 : vector<128xf32>
    %c1 = arith.constant 1 : index
    %c0_15 = arith.constant 0 : index
    %25 = vector.load %arg6[%c1, %c0_15] : memref<2x128xf32, #tpu.memory_space<vmem>>, vector<1x128xf32>
    %26 = vector.shape_cast %25 : vector<1x128xf32> to vector<128xf32>
    %27 = vector.shape_cast %24 : vector<128xf32> to vector<1x128xf32>
    tpu.vector_store %arg6[%c1, %c0_15], %27 {strides = array<i32>} : memref<2x128xf32, #tpu.memory_space<vmem>>, vector<1x128xf32>,
    return
  }
  func.func @transform_0(%arg0: i32) -> (i32, i32) {
    %c0_i32 = arith.constant 0 : i32
    %c0_i32_0 = arith.constant 0 : i32
    return %arg0, %c0_i32 : i32, i32
  }
  func.func @transform_1(%arg0: i32) -> (i32, i32) {
    %c0_i32 = arith.constant 0 : i32
    %c0_i32_0 = arith.constant 0 : i32
    return %arg0, %c0_i32 : i32, i32
  }
  func.func @transform_2(%arg0: i32) -> (i32, i32) {
    %c0_i32 = arith.constant 0 : i32
    %c0_i32_0 = arith.constant 0 : i32
    %c0_i32_1 = arith.constant 0 : i32
    return %c0_i32, %c0_i32_0 : i32, i32
  }
  func.func @transform_3(%arg0: i32) -> (i32, i32) {
    %c0_i32 = arith.constant 0 : i32
    %c0_i32_0 = arith.constant 0 : i32
    %c0_i32_1 = arith.constant 0 : i32
    return %c0_i32, %c0_i32_0 : i32, i32
  }
  func.func @transform_4(%arg0: i32) -> (i32, i32) {
    %c0_i32 = arith.constant 0 : i32
    %c0_i32_0 = arith.constant 0 : i32
    %c0_i32_1 = arith.constant 0 : i32
    return %c0_i32, %c0_i32_0 : i32, i32
  }
  func.func @transform_5(%arg0: i32) -> (i32, i32) {
    %c0_i32 = arith.constant 0 : i32
    %c0_i32_0 = arith.constant 0 : i32
    return %c0_i32, %arg0 : i32, i32
  }
}

</mosaic_0001>

<bundles_post_ra>
// kernel: skip_gram_forward.1
= control target key start
LH: loop header
LB: loop body
LE: loop exit
PB: predicated region body
PF: predicated region fallthrough
CT: control target
= control target key end

     0   :  { %vm116_vm0 = vcmask 130048   ;;  %s942_s0 = inlined_call_operand.vmem [shape: f32[128,16], index: 0, kind: input, shape index: {}]   ;;  %s943_s1 = inlined_call_operand.vmem [shape: f32[128,16], index: 1, kind: input, shape index: {}]   ;;  %s944_s2 = inlined_call_operand.vmem [shape: f32[1,16], index: 2, kind: input, shape index: {}]   ;;  %s945_s3 = inlined_call_operand.vmem [shape: f32[1,16], index: 3, kind: input, shape index: {}]   ;;  %s946_s4 = inlined_call_operand.<no memory space> [shape: f32[1,1], index: 4, kind: input, shape index: {}]   ;;  %s947_s5 = inlined_call_operand.hbm [shape: f32[2,128], index: 5, kind: output, shape index: {}]  }
   0x1   :  { %v22_v0 = vld [vmem:[%s942_s0] sm:$0xff]  ;;  %v24_v5 = vld [vmem:[%s942_s0 + $0x10] sm:$0xff]  ;;  %v23_v10 = vld [vmem:[%s942_s0 + $0x8] sm:$0xff] }
   0x2   :  { %v38_v1 = vld [vmem:[%s943_s1] sm:$0xff]  ;;  %v40_v6 = vld [vmem:[%s943_s1 + $0x10] sm:$0xff]  ;;  %v39_v11 = vld [vmem:[%s943_s1 + $0x8] sm:$0xff] }
   0x3   :  { %v666_v2 = vld [vmem:[%s944_s2] ss:$0 sm:$0xff]  ;;  %v25_v12 = vld [vmem:[%s942_s0 + $0x18] sm:$0xff]  ;;  %v27_v23 = vld [vmem:[%s942_s0 + $0x28] sm:$0xff] }
   0x4   :  { %v61_v3 = vmul.f32 %v666_v2, %v22_v0  ;;  %v672_v4 = vld [vmem:[%s945_s3] ss:$0 sm:$0xff]  ;;  %v63_v8 = vmul.f32 %v666_v2, %v24_v5  ;;  %v62_v13 = vmul.f32 %v666_v2, %v23_v10  ;;  %v41_v15 = vld [vmem:[%s943_s1 + $0x18] sm:$0xff]  ;;  %v64_v16 = vmul.f32 %v666_v2, %v25_v12  ;;  %v43_v24 = vld [vmem:[%s943_s1 + $0x28] sm:$0xff] }
   0x5   :  { %v84_v7 = vmul.f32 %v672_v4, %v38_v1  ;;  %v86_v9 = vmul.f32 %v672_v4, %v40_v6  ;;  %v85_v14 = vmul.f32 %v672_v4, %v39_v11  ;;  %v26_v17 = vld [vmem:[%s942_s0 + $0x20] sm:$0xff]  ;;  %v87_v21 = vmul.f32 %v672_v4, %v41_v15  ;;  %v28_v25 = vld [vmem:[%s942_s0 + $0x30] sm:$0xff]  ;;  %v29_v31 = vld [vmem:[%s942_s0 + $0x38] sm:$0xff] }
   0x6   :  { %v42_v18 = vld [vmem:[%s943_s1 + $0x20] sm:$0xff]  ;;  %v65_v22 = vmul.f32 %v666_v2, %v26_v17  ;;  %v66_v28 = vmul.f32 %v666_v2, %v27_v23  ;;  %v89_v29 = vmul.f32 %v672_v4, %v43_v24  ;;  %v44_v30 = vld [vmem:[%s943_s1 + $0x30] sm:$0xff]  ;;  %v45_v32 = vld [vmem:[%s943_s1 + $0x38] sm:$0xff]  ;;  %v67_v38 = vmul.f32 %v666_v2, %v28_v25 }
   0x7   :  { %v100_v19 = vadd.f32 %v84_v7, %v61_v3  ;;  %v102_v20 = vadd.f32 %v86_v9, %v63_v8  ;;  %v101_v26 = vadd.f32 %v85_v14, %v62_v13  ;;  %v88_v27 = vmul.f32 %v672_v4, %v42_v18  ;;  %v30_v44 = vld [vmem:[%s942_s0 + $0x40] sm:$0xff]  ;;  %v31_v46 = vld [vmem:[%s942_s0 + $0x48] sm:$0xff] }
   0x8   :  { %v103_v35 = vadd.f32 %v87_v21, %v64_v16  ;;  %v90_v39 = vmul.f32 %v672_v4, %v44_v30  ;;  %v105_v41 = vadd.f32 %v89_v29, %v66_v28  ;;  %v68_v42 = vmul.f32 %v666_v2, %v29_v31  ;;  %v46_v45 = vld [vmem:[%s943_s1 + $0x40] sm:$0xff]  ;;  %v47_v47 = vld [vmem:[%s943_s1 + $0x48] sm:$0xff] }
   0x9   :  { %v117_v33 = vsel %vm116_vm0, %v100_v19, 0.0  ;;  %v123_v34 = vsel %vm116_vm0, %v102_v20, 0.0  ;;  %v120_v36 = vsel %vm116_vm0, %v101_v26, 0.0  ;;  %v104_v37 = vadd.f32 %v88_v27, %v65_v22 }
   0xa   :  { %118 = vadd.xlane.f32.xlu0 %v117_v33  ;;  %124 = vadd.xlane.f32.xlu1 %v123_v34  ;;  %v126_v40 = vsel %vm116_vm0, %v103_v35, 0.0  ;;  %v91_v43 = vmul.f32 %v672_v4, %v45_v32  ;;  %v106_v49 = vadd.f32 %v90_v39, %v67_v38  ;;  %v69_v50 = vmul.f32 %v666_v2, %v30_v44 }
   0xb   :  { %v129_v48 = vsel %vm116_vm0, %v104_v37, 0.0  ;;  %v92_v51 = vmul.f32 %v672_v4, %v46_v45 }
   0xe   :  { %121 = vadd.xlane.f32.xlu0 %v120_v36  ;;  %127 = vadd.xlane.f32.xlu1 %v126_v40 }
   0xf   :  { %11 = vsyncpa [#allocation4], 0  ;;  %v132_v52 = vsel %vm116_vm0, %v105_v41, 0.0  ;;  %v107_v53 = vadd.f32 %v91_v43, %v68_v42  ;;  %v70_v54 = vmul.f32 %v666_v2, %v31_v46  ;;  %v93_v55 = vmul.f32 %v672_v4, %v47_v47  ;;  %v32_v56 = vld [vmem:[%s942_s0 + $0x50] sm:$0xff]  ;;  %v33_v58 = vld [vmem:[%s942_s0 + $0x58] sm:$0xff] }
  0x10   :  { %v48_v57 = vld [vmem:[%s943_s1 + $0x50] sm:$0xff]  ;;  %v49_v59 = vld [vmem:[%s943_s1 + $0x58] sm:$0xff]  ;;  %v135_v60 = vsel %vm116_vm0, %v106_v49, 0.0  ;;  %v108_v61 = vadd.f32 %v92_v51, %v69_v50  ;;  %v71_v62 = vmul.f32 %v666_v2, %v32_v56  ;;  %v72_v3 = vmul.f32 %v666_v2, %v33_v58  ;;  %v34_v6 = vld [vmem:[%s942_s0 + $0x60] sm:$0xff] }
  0x11   :  { %v94_v63 = vmul.f32 %v672_v4, %v48_v57  ;;  %v138_v0 = vsel %vm116_vm0, %v107_v53, 0.0  ;;  %v109_v1 = vadd.f32 %v93_v55, %v70_v54  ;;  %v95_v5 = vmul.f32 %v672_v4, %v49_v59  ;;  %v50_v7 = vld [vmem:[%s943_s1 + $0x60] sm:$0xff]  ;;  %v35_v8 = vld [vmem:[%s942_s0 + $0x68] sm:$0xff]  ;;  %v36_v18 = vld [vmem:[%s942_s0 + $0x70] sm:$0xff] }
  0x12   :  { %130 = vadd.xlane.f32.xlu0 %v129_v48  ;;  %133 = vadd.xlane.f32.xlu1 %v132_v52  ;;  %v51_v9 = vld [vmem:[%s943_s1 + $0x68] sm:$0xff]  ;;  %v141_v10 = vsel %vm116_vm0, %v108_v61, 0.0  ;;  %v73_v12 = vmul.f32 %v666_v2, %v34_v6  ;;  %v96_v13 = vmul.f32 %v672_v4, %v50_v7  ;;  %v74_v16 = vmul.f32 %v666_v2, %v35_v8  ;;  %v52_v19 = vld [vmem:[%s943_s1 + $0x70] sm:$0xff]  ;;  %v37_v20 = vld [vmem:[%s942_s0 + $0x78] sm:$0xff] }
  0x13   :  { %v110_v11 = vadd.f32 %v94_v63, %v71_v62  ;;  %v144_v14 = vsel %vm116_vm0, %v109_v1, 0.0  ;;  %v111_v15 = vadd.f32 %v95_v5, %v72_v3  ;;  %v97_v17 = vmul.f32 %v672_v4, %v51_v9  ;;  %v53_v21 = vld [vmem:[%s943_s1 + $0x78] sm:$0xff] }
  0x14   :  { %v112_v23 = vadd.f32 %v96_v13, %v73_v12  ;;  %v75_v24 = vmul.f32 %v666_v2, %v36_v18  ;;  %v98_v25 = vmul.f32 %v672_v4, %v52_v19  ;;  %v76_v28 = vmul.f32 %v666_v2, %v37_v20 }
  0x15   :  { %v147_v22 = vsel %vm116_vm0, %v110_v11, 0.0  ;;  %v150_v26 = vsel %vm116_vm0, %v111_v15, 0.0  ;;  %v113_v27 = vadd.f32 %v97_v17, %v74_v16  ;;  %v99_v29 = vmul.f32 %v672_v4, %v53_v21 }
  0x16   :  { %136 = vadd.xlane.f32.xlu0 %v135_v60  ;;  %139 = vadd.xlane.f32.xlu1 %v138_v0  ;;  %v153_v30 = vsel %vm116_vm0, %v112_v23, 0.0  ;;  %v114_v32 = vadd.f32 %v98_v25, %v75_v24  ;;  %v814_v2 = vstv %s946_s4  ;;  %v295_v49 = vlaneseq  ;;  %s626_s4 = smov [#allocation3]  }
  0x17   :  { %v156_v31 = vsel %vm116_vm0, %v113_v27, 0.0  ;;  %v115_v33 = vadd.f32 %v99_v29, %v76_v28  ;;  %vm306_vm1 = vcmask 130112   ;;  %vm313_vm2 = vcmask 195712   ;;  %s527_s3 = sshll.u32 %s626_s4, 4  ;;  %s528_s3 = int_to_ptr.vmem [resolvable:$true] %s527_s3 }
  0x18   :  { %v159_v34 = vsel %vm116_vm0, %v114_v32, 0.0  ;;  %v822_v58 = vand.u32 127, %v295_v49  ;;  %v826_v5 = vshrl.u32 %v295_v49, 7  ;;  %vm320_vm3 = vcmask 261312   ;;  %s602_s6 = scalar_lea.vmem %s528_s3, 32  ;;  %p607_p1 = scmp.lt.s32.totalorder %s528_s3, %s528_s3 }
  0x19   :  { %v162_v35 = vsel %vm116_vm0, %v115_v33, 0.0  ;;  %vm327_vm4 = vcmask 326912   ;;  %vm334_vm5 = vcmask 392512   ;;  %vm341_vm6 = vcmask 458112   ;;  %p603_p0 = scmp.ne.s32.totalorder %s528_s3, %s602_s6  ;;  %p608_p2 = scmp.lt.s32.totalorder %s602_s6, %s602_s6 }
  0x1a   :  { %142 = vadd.xlane.f32.xlu0 %v141_v10  ;;  %145 = vadd.xlane.f32.xlu1 %v144_v14  ;;  %v308_v6 = vadd.s32 4294967280, %v822_v58  ;;  %v301_v7 = vadd.s32 4294967288, %v822_v58  ;;  %v315_v11 = vadd.s32 4294967272, %v822_v58  ;;  %v835_v21 = vsub.s32 %v822_v58, %v826_v5 }
  0x1b   :  { %vm348_vm7 = vcmask 523712   ;;  %vm355_vm8 = vcmask 589312   ;;  %vm362_vm9 = vcmask 654912   ;;  %vm369_vm10 = vcmask 720512   ;;  %p609_p3 = por %p608_p2, %p607_p1 }
  0x1c   :  { %v841_v23 = vsub.s32 %v301_v7, %v826_v5  ;;  %v844_v27 = vsub.s32 %v315_v11, %v826_v5  ;;  %vm376_vm11 = vcmask 786112   ;;  %vm383_vm12 = vcmask 851712  }
  0x1d   :  { %vm390_vm13 = vcmask 917312   ;;  %vm397_vm14 = vcmask 982912   ;;  %vm404_vm15 = vcmask 1048512   ;;  %p610_p4 = pnand %p609_p3, %p603_p0 }
  0x1e   :  { %148 = vadd.xlane.f32.xlu0 %v147_v22  ;;  %151 = vadd.xlane.f32.xlu1 %v150_v26  ;;  %v838_v22 = vsub.s32 %v308_v6, %v826_v5 }
  0x22   :  { %154 = vadd.xlane.f32.xlu0 %v153_v30  ;;  %157 = vadd.xlane.f32.xlu1 %v156_v31 }
  0x26   :  { %160 = vadd.xlane.f32.xlu0 %v159_v34  ;;  %163 = vadd.xlane.f32.xlu1 %v162_v35  ;;  %v322_v35 = vadd.s32 4294967264, %v822_v58 }
  0x97   :  { %v119_v4 = vpop.xlane.xlu0 %118  ;;  %v125_v36 = vpop.xlane.xlu1 %124 }
  0x98   :  { %v167_v37 = vadd.f32 %v814_v2, %v119_v4  ;;  %v169_v38 = vadd.f32 %v814_v2, %v125_v36  ;;  %v329_v36 = vadd.s32 4294967256, %v822_v58 }
  0x9a   :  { %v183_v39 = vsub.f32 0.0, %v167_v37  ;;  %v185_v40 = vsub.f32 0.0, %v169_v38  ;;  %v336_v37 = vadd.s32 4294967248, %v822_v58 }
  0x9b   :  { %v122_v41 = vpop.xlane.xlu0 %121  ;;  %v128_v42 = vpop.xlane.xlu1 %127 }
  0x9c   :  { %v199_v43 = vmul.f32 1.442695, %v183_v39  ;;  %v203_v44 = vmul.f32 1.442695, %v185_v40  ;;  %v168_v45 = vadd.f32 %v814_v2, %v122_v41  ;;  %v170_v46 = vadd.f32 %v814_v2, %v128_v42 }
  0x9e   :  { %538 = vpow2.f32 %v199_v43  ;;  %v184_v47 = vsub.f32 0.0, %v168_v45  ;;  %v186_v48 = vsub.f32 0.0, %v170_v46 }
  0x9f   :  { %540 = vpow2.f32 %v203_v44  ;;  %v131_v50 = vpop.xlane.xlu0 %130  ;;  %v134_v51 = vpop.xlane.xlu1 %133 }
  0xa0   :  { %v201_v52 = vmul.f32 1.442695, %v184_v47  ;;  %v205_v53 = vmul.f32 1.442695, %v186_v48  ;;  %v171_v54 = vadd.f32 %v814_v2, %v131_v50  ;;  %v172_v55 = vadd.f32 %v814_v2, %v134_v51 }
  0xa1   :  { %v343_v47 = vadd.s32 4294967240, %v822_v58 }
  0xa2   :  { %542 = vpow2.f32 %v201_v52  ;;  %v187_v56 = vsub.f32 0.0, %v171_v54  ;;  %v188_v57 = vsub.f32 0.0, %v172_v55  ;;  %v855_v52 = vsub.s32 %v322_v35, %v826_v5 }
  0xa3   :  { %544 = vpow2.f32 %v205_v53  ;;  %v137_v59 = vpop.xlane.xlu0 %136  ;;  %v140_v60 = vpop.xlane.xlu1 %139  ;;  %v858_v53 = vsub.s32 %v329_v36, %v826_v5  ;;  %v866_v6 = vsub.s32 %v343_v47, %v826_v5  ;;  %v364_v47 = vadd.s32 4294967216, %v822_v58 }
  0xa4   :  { %v207_v61 = vmul.f32 1.442695, %v187_v56  ;;  %v209_v62 = vmul.f32 1.442695, %v188_v57  ;;  %v173_v63 = vadd.f32 %v814_v2, %v137_v59  ;;  %v174_v0 = vadd.f32 %v814_v2, %v140_v60 }
  0xa6   :  { %546 = vpow2.f32 %v207_v61  ;;  %v189_v1 = vsub.f32 0.0, %v173_v63  ;;  %v190_v3 = vsub.f32 0.0, %v174_v0 }
  0xa7   :  { %548 = vpow2.f32 %v209_v62  ;;  %v143_v8 = vpop.xlane.xlu0 %142  ;;  %v146_v9 = vpop.xlane.xlu1 %145  ;;  %v862_v62 = vsub.s32 %v336_v37, %v826_v5 }
  0xa8   :  { %v539_v10 = vpop.eup %538  ;;  %v211_v12 = vmul.f32 1.442695, %v189_v1  ;;  %v175_v13 = vadd.f32 %v814_v2, %v143_v8  ;;  %v176_v14 = vadd.f32 %v814_v2, %v146_v9  ;;  %v213_v17 = vmul.f32 1.442695, %v190_v3 }
  0xa9   :  { %v541_v15 = vpop.eup %540  ;;  %v231_v16 = vadd.f32 1.0, %v539_v10  ;;  %v350_v10 = vadd.s32 4294967232, %v822_v58 }
  0xaa   :  { %v233_v18 = vadd.f32 1.0, %v541_v15  ;;  %550 = vpow2.f32 %v211_v12  ;;  %v191_v19 = vsub.f32 0.0, %v175_v13  ;;  %v192_v20 = vsub.f32 0.0, %v176_v14 }
  0xab   :  { %552 = vrcp.f32 %v231_v16  ;;  %v149_v24 = vpop.xlane.xlu0 %148  ;;  %v152_v25 = vpop.xlane.xlu1 %151  ;;  %v357_v14 = vadd.s32 4294967224, %v822_v58 }
  0xac   :  { %v543_v26 = vpop.eup %542  ;;  %554 = vrcp.f32 %v233_v18  ;;  %v215_v28 = vmul.f32 1.442695, %v191_v19  ;;  %v177_v29 = vadd.f32 %v814_v2, %v149_v24  ;;  %v217_v32 = vmul.f32 1.442695, %v192_v20 }
  0xad   :  { %v545_v30 = vpop.eup %544  ;;  %v232_v31 = vadd.f32 1.0, %v543_v26  ;;  %556 = vpow2.f32 %v213_v17  ;;  %v178_v33 = vadd.f32 %v814_v2, %v152_v25 }
  0xae   :  { %v234_v34 = vadd.f32 1.0, %v545_v30  ;;  %558 = vpow2.f32 %v215_v28  ;;  %v193_v4 = vsub.f32 0.0, %v177_v29 }
  0xaf   :  { %560 = vrcp.f32 %v232_v31  ;;  %v194_v38 = vsub.f32 0.0, %v178_v33  ;;  %v155_v39 = vpop.xlane.xlu0 %154  ;;  %v158_v40 = vpop.xlane.xlu1 %157 }
  0xb0   :  { %v547_v41 = vpop.eup %546  ;;  %562 = vrcp.f32 %v234_v34  ;;  %v219_v42 = vmul.f32 1.442695, %v193_v4  ;;  %v179_v43 = vadd.f32 %v814_v2, %v155_v39  ;;  %v180_v44 = vadd.f32 %v814_v2, %v158_v40 }
  0xb1   :  { %v549_v45 = vpop.eup %548  ;;  %v235_v46 = vadd.f32 1.0, %v547_v41  ;;  %564 = vpow2.f32 %v217_v32  ;;  %v221_v48 = vmul.f32 1.442695, %v194_v38  ;;  %v353_v41 = vsub.s32 %v350_v10, %v826_v5 }
  0xb2   :  { %v236_v49 = vadd.f32 1.0, %v549_v45  ;;  %566 = vpow2.f32 %v219_v42  ;;  %v195_v50 = vsub.f32 0.0, %v179_v43  ;;  %v196_v51 = vsub.f32 0.0, %v180_v44 }
  0xb3   :  { %568 = vrcp.f32 %v235_v46  ;;  %v161_v54 = vpop.xlane.xlu0 %160  ;;  %v164_v55 = vpop.xlane.xlu1 %163  ;;  %v360_v46 = vsub.s32 %v357_v14, %v826_v5 }
  0xb4   :  { %v551_v56 = vpop.eup %550  ;;  %570 = vrcp.f32 %v236_v49  ;;  %v223_v57 = vmul.f32 1.442695, %v195_v50  ;;  %v225_v59 = vmul.f32 1.442695, %v196_v51  ;;  %v181_v60 = vadd.f32 %v814_v2, %v161_v54 }
  0xb5   :  { %v553_v61 = vpop.eup %552  ;;  %v237_v63 = vadd.f32 1.0, %v551_v56  ;;  %572 = vpow2.f32 %v221_v48  ;;  %v182_v0 = vadd.f32 %v814_v2, %v164_v55 }
  0xb6   :  { %v555_v1 = vpop.eup %554  ;;  %v408_v3 = vsub.f32 1.0, %v553_v61  ;;  %574 = vpow2.f32 %v223_v57  ;;  %v197_v7 = vsub.f32 0.0, %v181_v60  ;;  %v300_v16 = vrot.slane %v553_v61, %v835_v21 }
  0xb7   :  { %v557_v8 = vpop.eup %556  ;;  %v410_v9 = vsub.f32 1.0, %v555_v1  ;;  %576 = vrcp.f32 %v237_v63  ;;  %v198_v11 = vsub.f32 0.0, %v182_v0  ;;  %v312_v17 = vrot.slane %v555_v1, %v838_v22 }
  0xb8   :  { %v559_v12 = vpop.eup %558  ;;  %v238_v13 = vadd.f32 1.0, %v557_v8  ;;  %578 = vpow2.f32 %v225_v59  ;;  %v227_v2 = vmul.f32 1.442695, %v197_v7  ;;  %v443_v24 = vrot.slane %v408_v3, %v835_v21 }
  0xb9   :  { %v561_v15 = vpop.eup %560  ;;  %v239_v18 = vadd.f32 1.0, %v559_v12  ;;  %v229_v19 = vmul.f32 1.442695, %v198_v11  ;;  %v452_v29 = vrot.slane %v410_v9, %v838_v22  ;;  %v367_v3 = vsub.s32 %v364_v47, %v826_v5 }
  0xba   :  { %v563_v20 = vpop.eup %562  ;;  %v305_v25 = vrot.slane %v561_v15, %v841_v23  ;;  %v409_v26 = vsub.f32 1.0, %v561_v15  ;;  %580 = vrcp.f32 %v238_v13 }
  0xbb   :  { %v565_v28 = vpop.eup %564  ;;  %v319_v30 = vrot.slane %v563_v20, %v844_v27  ;;  %v411_v31 = vsub.f32 1.0, %v563_v20  ;;  %582 = vrcp.f32 %v239_v18 }
  0xbc   :  { %v567_v32 = vpop.eup %566  ;;  %v307_v33 = vsel %vm306_vm1, %v305_v25, %v300_v16  ;;  %v447_v34 = vrot.slane %v409_v26, %v841_v23  ;;  %v240_v35 = vadd.f32 1.0, %v565_v28  ;;  %584 = vpow2.f32 %v227_v2 }
  0xbd   :  { %v569_v21 = vpop.eup %568  ;;  %v314_v4 = vsel %vm313_vm2, %v312_v17, %v307_v33  ;;  %v457_v36 = vrot.slane %v411_v31, %v844_v27  ;;  %v241_v37 = vadd.f32 1.0, %v567_v32  ;;  %586 = vpow2.f32 %v229_v19 }
  0xbe   :  { %v571_v22 = vpop.eup %570  ;;  %v448_v38 = vsel %vm306_vm1, %v447_v34, %v443_v24  ;;  %v326_v39 = vrot.slane %v569_v21, %v855_v52  ;;  %v412_v40 = vsub.f32 1.0, %v569_v21  ;;  %v321_v23 = vsel %vm320_vm3, %v319_v30, %v314_v4 }
  0xbf   :  { %v573_v42 = vpop.eup %572  ;;  %v453_v43 = vsel %vm313_vm2, %v452_v29, %v448_v38  ;;  %v413_v44 = vsub.f32 1.0, %v571_v22  ;;  %588 = vrcp.f32 %v240_v35  ;;  %v333_v50 = vrot.slane %v571_v22, %v858_v53 }
  0xc0   :  { %v575_v45 = vpop.eup %574  ;;  %v462_v27 = vrot.slane %v412_v40, %v855_v52  ;;  %590 = vrcp.f32 %v241_v37  ;;  %v458_v49 = vsel %vm320_vm3, %v457_v36, %v453_v43  ;;  %v242_v51 = vadd.f32 1.0, %v573_v42 }
  0xc1   :  { %v577_v48 = vpop.eup %576  ;;  %v243_v54 = vadd.f32 1.0, %v575_v45  ;;  %v328_v56 = vsel %vm327_vm4, %v326_v39, %v321_v23  ;;  %v371_v52 = vadd.s32 4294967208, %v822_v58  ;;  %v467_v60 = vrot.slane %v413_v44, %v858_v53 }
  0xc2   :  { %v579_v55 = vpop.eup %578  ;;  %v340_v57 = vrot.slane %v577_v48, %v862_v62  ;;  %v414_v59 = vsub.f32 1.0, %v577_v48  ;;  %592 = vrcp.f32 %v242_v51  ;;  %v463_v0 = vsel %vm327_vm4, %v462_v27, %v458_v49 }
  0xc3   :  { %v244_v61 = vadd.f32 1.0, %v579_v55  ;;  %594 = vrcp.f32 %v243_v54  ;;  %v335_v8 = vsel %vm334_vm5, %v333_v50, %v328_v56  ;;  %v468_v2 = vsel %vm334_vm5, %v467_v60, %v463_v0 }
  0xc4   :  { %v581_v63 = vpop.eup %580  ;;  %v472_v1 = vrot.slane %v414_v59, %v862_v62  ;;  %v342_v53 = vsel %vm341_vm6, %v340_v57, %v335_v8  ;;  %v378_v16 = vadd.s32 4294967200, %v822_v58  ;;  %v374_v19 = vsub.s32 %v371_v52, %v826_v5 }
  0xc5   :  { %v583_v7 = vpop.eup %582  ;;  %v347_v9 = vrot.slane %v581_v63, %v866_v6  ;;  %v415_v10 = vsub.f32 1.0, %v581_v63  ;;  %596 = vrcp.f32 %v244_v61  ;;  %v385_v26 = vadd.s32 4294967192, %v822_v58 }
  0xc6   :  { %v585_v11 = vpop.eup %584  ;;  %v354_v12 = vrot.slane %v583_v7, %v353_v41  ;;  %v416_v13 = vsub.f32 1.0, %v583_v7  ;;  %v473_v17 = vsel %vm341_vm6, %v472_v1, %v468_v2  ;;  %v381_v33 = vsub.s32 %v378_v16, %v826_v5 }
  0xc7   :  { %v587_v14 = vpop.eup %586  ;;  %v477_v62 = vrot.slane %v415_v10, %v866_v6  ;;  %v245_v15 = vadd.f32 1.0, %v585_v11  ;;  %v349_v25 = vsel %vm348_vm7, %v347_v9, %v342_v53  ;;  %v392_v21 = vadd.s32 4294967184, %v822_v58 }
  0xc8   :  { %v482_v18 = vrot.slane %v416_v13, %v353_v41  ;;  %v246_v20 = vadd.f32 1.0, %v587_v14  ;;  %v356_v6 = vsel %vm355_vm8, %v354_v12, %v349_v25  ;;  %v388_v38 = vsub.s32 %v385_v26, %v826_v5 }
  0xc9   :  { %v589_v24 = vpop.eup %588  ;;  %598 = vrcp.f32 %v245_v15  ;;  %v478_v34 = vsel %vm348_vm7, %v477_v62, %v473_v17  ;;  %v399_v39 = vadd.s32 4294967176, %v822_v58 }
  0xca   :  { %v591_v28 = vpop.eup %590  ;;  %v361_v29 = vrot.slane %v589_v24, %v360_v46  ;;  %v417_v30 = vsub.f32 1.0, %v589_v24  ;;  %600 = vrcp.f32 %v246_v20  ;;  %v483_v4 = vsel %vm355_vm8, %v482_v18, %v478_v34 }
  0xcb   :  { %v368_v31 = vrot.slane %v591_v28, %v367_v3  ;;  %v418_v32 = vsub.f32 1.0, %v591_v28  ;;  %v402_v51 = vsub.s32 %v399_v39, %v826_v5 }
  0xcc   :  { %v487_v35 = vrot.slane %v417_v30, %v360_v46  ;;  %v593_v36 = vpop.eup %592  ;;  %v363_v22 = vsel %vm362_vm9, %v361_v29, %v356_v6  ;;  %v395_v46 = vsub.s32 %v392_v21, %v826_v5 }
  0xcd   :  { %v492_v37 = vrot.slane %v418_v32, %v367_v3  ;;  %v595_v40 = vpop.eup %594  ;;  %v375_v41 = vrot.slane %v593_v36, %v374_v19  ;;  %v419_v42 = vsub.f32 1.0, %v593_v36  ;;  %v370_v23 = vsel %vm369_vm10, %v368_v31, %v363_v22 }
  0xce   :  { %v420_v44 = vsub.f32 1.0, %v595_v40  ;;  %v382_v45 = vrot.slane %v595_v40, %v381_v33  ;;  %v488_v27 = vsel %vm362_vm9, %v487_v35, %v483_v4 }
  0xcf   :  { %v597_v43 = vpop.eup %596  ;;  %v493_v48 = vsel %vm369_vm10, %v492_v37, %v488_v27  ;;  %v497_v49 = vrot.slane %v419_v42, %v374_v19  ;;  %v377_v58 = vsel %vm376_vm11, %v375_v41, %v370_v23 }
  0xd0   :  { %v421_v47 = vsub.f32 1.0, %v597_v43  ;;  %v389_v50 = vrot.slane %v597_v43, %v388_v38  ;;  %v502_v54 = vrot.slane %v420_v44, %v381_v33  ;;  %v384_v55 = vsel %vm383_vm12, %v382_v45, %v377_v58 }
  0xd1   :  { %v498_v57 = vsel %vm376_vm11, %v497_v49, %v493_v48 }
  0xd2   :  { %v507_v59 = vrot.slane %v421_v47, %v388_v38  ;;  %v503_v63 = vsel %vm383_vm12, %v502_v54, %v498_v57  ;;  %v391_v0 = vsel %vm390_vm13, %v389_v50, %v384_v55 }
  0xd3   :  { %v599_v56 = vpop.eup %598 }
  0xd4   :  { %v601_v52 = vpop.eup %600  ;;  %v396_v60 = vrot.slane %v599_v56, %v395_v46  ;;  %v422_v61 = vsub.f32 1.0, %v599_v56  ;;  %v508_v9 = vsel %vm390_vm13, %v507_v59, %v503_v63 }
  0xd5   :  { %v403_v1 = vrot.slane %v601_v52, %v402_v51  ;;  %v423_v3 = vsub.f32 1.0, %v601_v52 }
  0xd6   :  { %v398_v5 = vsel %vm397_vm14, %v396_v60, %v391_v0  ;;  %v512_v7 = vrot.slane %v422_v61, %v395_v46 }
  0xd7   :  { %v405_v8 = vsel %vm404_vm15, %v403_v1, %v398_v5  ;;  %v517_v10 = vrot.slane %v423_v3, %v402_v51 }
  0xd8   :  { %407 = vst [vmem:[#allocation3] sm:$0x1] %v405_v8  ;;  %v513_v11 = vsel %vm397_vm14, %v512_v7, %v508_v9 }
  0xd9   :  { %v518_v53 = vsel %vm404_vm15, %v517_v10, %v513_v11 }
  0xda   :  { %520 = vst [vmem:[#allocation3 + $0x1] sm:$0x1] %v518_v53 }
  0xdb   :  { %613 = shalt.err (!%p610_p4)
}
  0xdc   :  { %s614_s9 = scalar_lea.hbm %s947_s5, 32 }
  0xdd   :  { %p615_p5 = scmp.ne.s32.totalorder %s947_s5, %s614_s9  ;;  %p618_p6 = scmp.lt.u32.totalorder %s614_s9, %s947_s5 }
  0xdf   :  { %p620_p7 = pnand %p618_p6, %p615_p5 }
  0xe1   :  { %623 = shalt.err (!%p620_p7)
}
  0xe2   :  { %530 = dma.vmem_to_hbm [thread:$0]  %s528_s3, 32, %s947_s5, [#allocation4]  }
  0xe3   :  { %624 = dma.done.wait [#allocation4], 32  }
  0xe4   :  { %625 = vsyncadd [#allocation4], 4294967264 }
  0xe5   :  { %534 = vsyncpa [#allocation4], 1 }

</bundles_post_ra>
